<compile_context>
chip_gen: v5e
topology: v5e:2x2
jax: 0.10.0
libtpu: 0.0.40
codegen_flags: <defaults>
</compile_context>

<pallas_src>
import jax
import jax.numpy as jnp
from jax.experimental import pallas as pl
from jax.experimental.pallas import tpu as pltpu

_LANE = 128
_SMALL_BYTES = 256 * 1024          # below this, launch overhead > copy cost
_TARGET_BLOCK_BYTES = 4 * 1024 * 1024
_MAX_VMEM_NEED = 48 * 1024 * 1024  # stay well under v7x's 64 MiB per TC


def _identity_kernel(x_ref, o_ref):
    # Hot path: straight VMEM tile copy (identity).
    o_ref[...] = x_ref[...]


def _sublane_multiple(dtype):
    itemsize = jnp.dtype(dtype).itemsize
    if itemsize >= 4:
        return 8      # f32 / i32
    if itemsize == 2:
        return 16     # bf16 / f16 pack 16 rows per vreg sublane group
    return 32         # int8 / fp8


def _lane_dense_view(x):
    """Reshape the flat tensor to (rows, cols) with cols a large multiple of 128."""
    total = x.size
    itemsize = jnp.dtype(x.dtype).itemsize
    if total % _LANE != 0:
        # Rare fallback: keep the original last dim on lanes (full-dim block is legal).
        last = x.shape[-1]
        return x.reshape(total // last, last)
    cols = _LANE
    # Grow lane width while it divides the total and a row stays modest (<=128 KiB).
    while total % (cols * 2) == 0 and (cols * 2) * itemsize <= 128 * 1024:
        cols *= 2
    return x.reshape(total // cols, cols)


def _pallas_identity_copy(x2):
    rows, cols = x2.shape
    dtype = x2.dtype
    itemsize = jnp.dtype(dtype).itemsize
    sub = _sublane_multiple(dtype)

    # Largest sublane-aligned row tile within the block-byte target.
    max_tile_r = max(sub, (_TARGET_BLOCK_BYTES // max(1, cols * itemsize)) // sub * sub)
    if rows <= max_tile_r:
        tile_r = rows          # full array dim -> always a legal block shape
        grid_r = 1
    else:
        tile_r = max_tile_r
        grid_r = pl.cdiv(rows, tile_r)

    block_bytes = tile_r * cols * itemsize
    # 2 (double-buffer) x 2 (in + out) blocks live in VMEM at once.
    vmem_need = 4 * block_bytes + 2 * 1024 * 1024
    if vmem_need > _MAX_VMEM_NEED:
        # Cannot tile this view safely; identity is always correct without a kernel.
        return x2
    vmem_limit = max(vmem_need, 32 * 1024 * 1024)

    return pl.pallas_call(
        _identity_kernel,
        out_shape=jax.ShapeDtypeStruct((rows, cols), dtype),
        grid_spec=pltpu.PrefetchScalarGridSpec(
            num_scalar_prefetch=0,
            grid=(grid_r,),
            in_specs=[pl.BlockSpec((tile_r, cols), lambda i: (i, 0))],
            out_specs=pl.BlockSpec((tile_r, cols), lambda i: (i, 0)),
        ),
        compiler_params=pltpu.CompilerParams(
            dimension_semantics=("parallel",),
            vmem_limit_bytes=int(vmem_limit),
        ),
        input_output_aliases={0: 0},   # alias in->out: no extra HBM buffer
    )(x2)


def mean_encoder_forward(x, num_channels=None, force_pallas=False):
    """Identity forward, matching MeanEncoder.forward(x) -> x.

    `num_channels` is accepted for API parity with the PyTorch module but is
    unused (the module stores it and never uses it in forward).

    Default dispatch returns x directly (the module is a pure no-op); the
    Pallas copy kernel is only launched when `force_pallas=True` and the input
    is non-degenerate.
    """
    if x.ndim == 0 or x.size == 0:
        return x

    itemsize = jnp.dtype(x.dtype).itemsize
    if not force_pallas:
        # Pure identity: never pay HBM read+write + launch overhead for a no-op.
        return x
    if x.size * itemsize < 0 and False:  # placeholder to keep structure explicit
        return x

    orig_shape = x.shape
    x2 = _lane_dense_view(x)
    out = _pallas_identity_copy(x2)
    return out.reshape(orig_shape)


if __name__ == "__main__":
    key = jax.random.PRNGKey(0)
    # Small NCHW input consistent with a conv-feature encoder.
    N, C, H, W = 2, 4, 16, 16
    x = jax.random.normal(key, (N, C, H, W), dtype=jnp.float32)

    # Default (fast) path: pure identity, no kernel launch.
    y_fast = jax.block_until_ready(mean_encoder_forward(x, num_channels=C))
    assert y_fast.shape == x.shape and y_fast.dtype == x.dtype
    assert bool(jnp.array_equal(y_fast, x))

    # Explicitly exercise the Pallas copy path (lane-dense view, aliased output).
    y_pal = jax.block_until_ready(
        mean_encoder_forward(x, num_channels=C, force_pallas=True)
    )
    assert y_pal.shape == x.shape and y_pal.dtype == x.dtype
    assert bool(jnp.array_equal(y_pal, x))

    print("KERNEL_OK")
</pallas_src>

<mosaic_0001>
module attributes {stable_mosaic.version = 11 : i64} {
  func.func @_identity_kernel(%arg0: i32, %arg1: memref<1x2048xf32, #tpu.memory_space<vmem>>, %arg2: memref<1x2048xf32, #tpu.memory_space<vmem>>) attributes {dimension_semantics = [#tpu.dimension_semantics<parallel>], iteration_bounds = array<i64: 1>, scalar_prefetch = 0 : i64, scratch_operands = 0 : i64, tpu.core_type = #tpu.core_type<tc>, window_params = [{transform_indices = @transform_0, window_bounds = array<i64: 1, 2048>}, {transform_indices = @transform_1, window_bounds = array<i64: 1, 2048>}]} {
    %c0 = arith.constant 0 : index
    %c0_0 = arith.constant 0 : index
    %0 = vector.load %arg1[%c0, %c0_0] : memref<1x2048xf32, #tpu.memory_space<vmem>>, vector<1x2048xf32>
    %c0_1 = arith.constant 0 : index
    %c0_2 = arith.constant 0 : index
    %1 = vector.load %arg2[%c0_1, %c0_2] : memref<1x2048xf32, #tpu.memory_space<vmem>>, vector<1x2048xf32>
    tpu.vector_store %arg2[%c0_1, %c0_2], %0 {strides = array<i32>} : memref<1x2048xf32, #tpu.memory_space<vmem>>, vector<1x2048xf32>,
    return
  }
  func.func @transform_0(%arg0: i32) -> (i32, i32) {
    %c0_i32 = arith.constant 0 : i32
    %c0_i32_0 = arith.constant 0 : i32
    return %arg0, %c0_i32 : i32, i32
  }
  func.func @transform_1(%arg0: i32) -> (i32, i32) {
    %c0_i32 = arith.constant 0 : i32
    %c0_i32_0 = arith.constant 0 : i32
    return %arg0, %c0_i32 : i32, i32
  }
}

</mosaic_0001>

<bundles_post_ra>
// kernel: tpu_custom_call.1
= control target key start
LH: loop header
LB: loop body
LE: loop exit
PB: predicated region body
PF: predicated region fallthrough
CT: control target
= control target key end

     0   :  { %6 = vsyncpa [#allocation3], 0  ;;  %s116_s0 = inlined_call_operand.hbm [shape: f32[1,2048], index: 0, kind: input, shape index: {}, may-alias: {0,1}]   ;;  %s117_s1 = inlined_call_operand.hbm [shape: f32[1,2048], index: 1, kind: output, shape index: {}, may-alias: {0,1}]  }
   0x1   :  { %7 = vsyncpa [#allocation4], 0  ;;  %s13_s8 = sshll.u32 %s116_s0, 4  ;;  %s98_s9 = smov [#allocation2]   ;;  %s14_s8 = int_to_ptr.hbm [resolvable:$true] %s13_s8 }
   0x2   :  { %s15_s10 = sshll.u32 %s98_s9, 4  ;;  %s16_s10 = int_to_ptr.vmem [resolvable:$true] %s15_s10 }
   0x3   :  { %18 = dma.hbm_to_vmem [thread:$0]  %s14_s8, 256, %s16_s10, [#allocation3]  }
   0x4   :  { %94 = dma.done.wait [#allocation3], 256  }
   0x5   :  { %95 = vsyncadd [#allocation3], 4294967040  ;;  %s99_s11 = smov [#allocation5]   ;;  %s34_s15 = sshll.u32 %s117_s1, 4  ;;  %v23_v0 = vld [vmem:[#allocation2] sm:$0xff]  ;;  %v24_v1 = vld [vmem:[#allocation2 + $0x8] sm:$0xff]  ;;  %s35_s15 = int_to_ptr.hbm [resolvable:$true] %s34_s15 }
   0x6   :  { %s32_s12 = sshll.u32 %s99_s11, 4  ;;  %25 = vst [vmem:[#allocation5] sm:$0xff] %v23_v0  ;;  %s33_s12 = int_to_ptr.vmem [resolvable:$true] %s32_s12 }
   0x7   :  { %26 = vst [vmem:[#allocation5 + $0x8] sm:$0xff] %v24_v1 }
   0x8   :  { %37 = dma.vmem_to_hbm [thread:$0]  %s33_s12, 256, %s35_s15, [#allocation4]  }
   0x9   :  { %96 = dma.done.wait [#allocation4], 256  }
   0xa   :  { %97 = vsyncadd [#allocation4], 4294967040 }
   0xb   :  { %42 = vsyncpa [#allocation3], 1 }
   0xc   :  { %43 = vsyncpa [#allocation4], 1 }

</bundles_post_ra>
